<compile_context>
chip_gen: v5e
topology: v5e:2x2
jax: 0.10.0
libtpu: 0.0.40
codegen_flags: <defaults>
</compile_context>

<pallas_src>
import functools

import jax
import jax.numpy as jnp
from jax.experimental import pallas as pl
from jax.experimental.pallas import tpu as pltpu


def _cross_attention_kernel(
    gene_ref, drug_ref,
    wr_g_ref, br_g_ref, wc_g_ref, bc_g_ref, v_g_ref,
    wr_d_ref, br_d_ref, wc_d_ref, bc_d_ref, v_d_ref,
    att_gene_ref, att_drug_ref,
    *, inv_temp_gene, inv_temp_drug):
    """One batch tile of CrossAttentionFunction (both attention branches fused)."""
    gene = gene_ref[...]            # (TB, G) float32
    drug = drug_ref[...]            # (TB, D) float32

    def context_attention(ref, ctx, wr, br, wc, bc, v, inv_temp):
        # Linear projections (individual_nonlinearity == identity).
        ref_att = jnp.dot(ref, wr, preferred_element_type=jnp.float32) + br   # (TB, A)
        ctx_att = jnp.dot(ctx, wc, preferred_element_type=jnp.float32) + bc   # (TB, A)
        # alpha projection: Linear(A, 1, bias=False) == row-wise dot with v.
        e = jnp.sum(jnp.tanh(ref_att + ctx_att) * v, axis=-1, keepdims=True)  # (TB, 1)
        s = e * inv_temp
        # Softmax over the sequence axis.  Sequence length is 1, so max == s and
        # sum(exp) == exp(s - s): the attention weight is exactly 1.0.
        alpha = jnp.exp(s - s)
        # reference * alpha, summed over the length-1 sequence axis (no-op sum).
        return ref * alpha

    att_gene_ref[...] = context_attention(
        gene, drug, wr_g_ref[...], br_g_ref[...], wc_g_ref[...], bc_g_ref[...],
        v_g_ref[...], inv_temp_gene).astype(att_gene_ref.dtype)
    att_drug_ref[...] = context_attention(
        drug, gene, wr_d_ref[...], br_d_ref[...], wc_d_ref[...], bc_d_ref[...],
        v_d_ref[...], inv_temp_drug).astype(att_drug_ref.dtype)


def cross_attention_forward(gene, drug, params, *, temperature=1.0):
    """Pallas equivalent of CrossAttentionFunction.forward(gene, drug)."""
    (wr_g, br_g, wc_g, bc_g, v_g, wr_d, br_d, wc_d, bc_d, v_d) = params
    B, G = gene.shape
    Bd, D = drug.shape
    assert B == Bd, "gene/drug batch mismatch"

    # Batch tiling: one full-array block for small batches, 512-row blocks
    # (multiple of the 8-sublane tile) for large ones so VMEM stays bounded and
    # the grid axis can be sharded across TensorCores (v7x megacore).
    tb = 512 if (B > 512 and B % 512 == 0) else B
    grid = (B // tb,)

    batch_map = lambda i: (i, 0)     # batch-tiled operands
    whole_map = lambda i: (0, 0)     # weights: same full block every grid step

    kernel = functools.partial(
        _cross_attention_kernel,
        inv_temp_gene=1.0,                       # gene branch temperature fixed at 1.0
        inv_temp_drug=1.0 / float(temperature))  # drug branch uses `temperature`

    att_gene, att_drug = pl.pallas_call(
        kernel,
        out_shape=(jax.ShapeDtypeStruct((B, G), gene.dtype),
                   jax.ShapeDtypeStruct((B, D), drug.dtype)),
        grid=grid,
        in_specs=[
            pl.BlockSpec((tb, G), batch_map),
            pl.BlockSpec((tb, D), batch_map),
            pl.BlockSpec(wr_g.shape, whole_map),
            pl.BlockSpec(br_g.shape, whole_map),
            pl.BlockSpec(wc_g.shape, whole_map),
            pl.BlockSpec(bc_g.shape, whole_map),
            pl.BlockSpec(v_g.shape, whole_map),
            pl.BlockSpec(wr_d.shape, whole_map),
            pl.BlockSpec(br_d.shape, whole_map),
            pl.BlockSpec(wc_d.shape, whole_map),
            pl.BlockSpec(bc_d.shape, whole_map),
            pl.BlockSpec(v_d.shape, whole_map),
        ],
        out_specs=(pl.BlockSpec((tb, G), batch_map),
                   pl.BlockSpec((tb, D), batch_map)),
        compiler_params=pltpu.CompilerParams(
            dimension_semantics=("parallel",)),
    )(gene, drug, wr_g, br_g, wc_g, bc_g, v_g, wr_d, br_d, wc_d, bc_d, v_d)

    # torch.cat([attended_gene, attended_drug], dim=1); Squeeze(1) is a no-op here.
    return jnp.concatenate([att_gene, att_drug], axis=1)


def _reference_forward(gene, drug, params, *, temperature=1.0):
    """Pure-JAX replica of the PyTorch CrossAttentionFunction forward pass."""
    (wr_g, br_g, wc_g, bc_g, v_g, wr_d, br_d, wc_d, bc_d, v_d) = params
    g3 = gene[:, None, :]            # Unsqueeze(1)
    d3 = drug[:, None, :]

    def context_attention_layer(ref, ctx, wr, br, wc, bc, v, temp):
        ref_att = ref @ wr + br                                    # (B, 1, A)
        ctx_att = ctx @ wc + bc                                    # (B, 1, A)
        e = jnp.sum(jnp.tanh(ref_att + ctx_att) * v, axis=-1)      # (B, 1)
        alphas = jax.nn.softmax(e / temp, axis=1)                  # softmax over seq (len 1)
        return jnp.sum(ref * alphas[..., None], axis=1)            # (B, H)

    att_gene = context_attention_layer(g3, d3, wr_g, br_g, wc_g, bc_g, v_g, 1.0)
    att_drug = context_attention_layer(d3, g3, wr_d, br_d, wc_d, bc_d, v_d, temperature)
    return jnp.concatenate([att_gene, att_drug], axis=1)           # Squeeze(1) no-ops


if __name__ == "__main__":
    key = jax.random.PRNGKey(0)
    B = 2
    gene_embed, drug_embed = 32, 32
    gene_att, drug_att = 16, 16
    temperature = 2.0

    ks = jax.random.split(key, 12)
    gene = jax.random.normal(ks[0], (B, gene_embed), jnp.float32)
    drug = jax.random.normal(ks[1], (B, drug_embed), jnp.float32)

    params = (
        0.1 * jax.random.normal(ks[2], (gene_embed, gene_att), jnp.float32),   # wr_g
        0.1 * jax.random.normal(ks[3], (1, gene_att), jnp.float32),            # br_g
        0.1 * jax.random.normal(ks[4], (drug_embed, gene_att), jnp.float32),   # wc_g
        0.1 * jax.random.normal(ks[5], (1, gene_att), jnp.float32),            # bc_g
        0.1 * jax.random.normal(ks[6], (1, gene_att), jnp.float32),            # v_g
        0.1 * jax.random.normal(ks[7], (drug_embed, drug_att), jnp.float32),   # wr_d
        0.1 * jax.random.normal(ks[8], (1, drug_att), jnp.float32),            # br_d
        0.1 * jax.random.normal(ks[9], (gene_embed, drug_att), jnp.float32),   # wc_d
        0.1 * jax.random.normal(ks[10], (1, drug_att), jnp.float32),           # bc_d
        0.1 * jax.random.normal(ks[11], (1, drug_att), jnp.float32),           # v_d
    )

    out = cross_attention_forward(gene, drug, params, temperature=temperature)
    out = jax.block_until_ready(out)

    ref = _reference_forward(gene, drug, params, temperature=temperature)

    assert out.shape == (B, gene_embed + drug_embed), out.shape
    assert out.dtype == gene.dtype
    assert bool(jnp.allclose(out, ref, atol=1e-5, rtol=1e-5)), (
        f"max abs err = {float(jnp.max(jnp.abs(out - ref)))}")

    print("KERNEL_OK")
</pallas_src>

<mosaic_0001>
module attributes {stable_mosaic.version = 11 : i64} {
  func.func @_cross_attention_kernel(%arg0: i32, %arg1: memref<2x32xf32, #tpu.memory_space<vmem>>, %arg2: memref<2x32xf32, #tpu.memory_space<vmem>>, %arg3: memref<32x16xf32, #tpu.memory_space<vmem>>, %arg4: memref<1x16xf32, #tpu.memory_space<vmem>>, %arg5: memref<32x16xf32, #tpu.memory_space<vmem>>, %arg6: memref<1x16xf32, #tpu.memory_space<vmem>>, %arg7: memref<1x16xf32, #tpu.memory_space<vmem>>, %arg8: memref<32x16xf32, #tpu.memory_space<vmem>>, %arg9: memref<1x16xf32, #tpu.memory_space<vmem>>, %arg10: memref<32x16xf32, #tpu.memory_space<vmem>>, %arg11: memref<1x16xf32, #tpu.memory_space<vmem>>, %arg12: memref<1x16xf32, #tpu.memory_space<vmem>>, %arg13: memref<2x32xf32, #tpu.memory_space<vmem>>, %arg14: memref<2x32xf32, #tpu.memory_space<vmem>>) attributes {dimension_semantics = [#tpu.dimension_semantics<parallel>], iteration_bounds = array<i64: 1>, scalar_prefetch = 0 : i64, scratch_operands = 0 : i64, tpu.core_type = #tpu.core_type<tc>, window_params = [{transform_indices = @transform_0, window_bounds = array<i64: 2, 32>}, {transform_indices = @transform_1, window_bounds = array<i64: 2, 32>}, {pipeline_mode = #tpu.pipeline_mode<synchronous>, transform_indices = @transform_2, window_bounds = array<i64: 32, 16>}, {pipeline_mode = #tpu.pipeline_mode<synchronous>, transform_indices = @transform_3, window_bounds = array<i64: 1, 16>}, {pipeline_mode = #tpu.pipeline_mode<synchronous>, transform_indices = @transform_4, window_bounds = array<i64: 32, 16>}, {pipeline_mode = #tpu.pipeline_mode<synchronous>, transform_indices = @transform_5, window_bounds = array<i64: 1, 16>}, {pipeline_mode = #tpu.pipeline_mode<synchronous>, transform_indices = @transform_6, window_bounds = array<i64: 1, 16>}, {pipeline_mode = #tpu.pipeline_mode<synchronous>, transform_indices = @transform_7, window_bounds = array<i64: 32, 16>}, {pipeline_mode = #tpu.pipeline_mode<synchronous>, transform_indices = @transform_8, window_bounds = array<i64: 1, 16>}, {pipeline_mode = #tpu.pipeline_mode<synchronous>, transform_indices = @transform_9, window_bounds = array<i64: 32, 16>}, {pipeline_mode = #tpu.pipeline_mode<synchronous>, transform_indices = @transform_10, window_bounds = array<i64: 1, 16>}, {pipeline_mode = #tpu.pipeline_mode<synchronous>, transform_indices = @transform_11, window_bounds = array<i64: 1, 16>}, {transform_indices = @transform_12, window_bounds = array<i64: 2, 32>}, {transform_indices = @transform_13, window_bounds = array<i64: 2, 32>}]} {
    %c0 = arith.constant 0 : index
    %c0_0 = arith.constant 0 : index
    %0 = vector.load %arg1[%c0, %c0_0] : memref<2x32xf32, #tpu.memory_space<vmem>>, vector<2x32xf32>
    %c0_1 = arith.constant 0 : index
    %c0_2 = arith.constant 0 : index
    %1 = vector.load %arg2[%c0_1, %c0_2] : memref<2x32xf32, #tpu.memory_space<vmem>>, vector<2x32xf32>
    %c0_3 = arith.constant 0 : index
    %c0_4 = arith.constant 0 : index
    %2 = vector.load %arg3[%c0_3, %c0_4] : memref<32x16xf32, #tpu.memory_space<vmem>>, vector<32x16xf32>
    %c0_5 = arith.constant 0 : index
    %c0_6 = arith.constant 0 : index
    %3 = vector.load %arg4[%c0_5, %c0_6] : memref<1x16xf32, #tpu.memory_space<vmem>>, vector<1x16xf32>
    %c0_7 = arith.constant 0 : index
    %c0_8 = arith.constant 0 : index
    %4 = vector.load %arg5[%c0_7, %c0_8] : memref<32x16xf32, #tpu.memory_space<vmem>>, vector<32x16xf32>
    %c0_9 = arith.constant 0 : index
    %c0_10 = arith.constant 0 : index
    %5 = vector.load %arg6[%c0_9, %c0_10] : memref<1x16xf32, #tpu.memory_space<vmem>>, vector<1x16xf32>
    %c0_11 = arith.constant 0 : index
    %c0_12 = arith.constant 0 : index
    %6 = vector.load %arg7[%c0_11, %c0_12] : memref<1x16xf32, #tpu.memory_space<vmem>>, vector<1x16xf32>
    %cst = arith.constant dense<0.000000e+00> : vector<2x16xf32>
    %7 = tpu.matmul %0, %2, %cst {dimension_numbers = #tpu.dot_dimension_numbers<[1], [0], [0], [1], [0, 0, 1, 1], [], []>} : vector<2x32xf32>, vector<32x16xf32>, vector<2x16xf32> -> vector<2x16xf32>
    %8 = vector.broadcast %3 : vector<1x16xf32> to vector<2x16xf32>
    %9 = arith.addf %7, %8 : vector<2x16xf32>
    %cst_13 = arith.constant dense<0.000000e+00> : vector<2x16xf32>
    %10 = tpu.matmul %1, %4, %cst_13 {dimension_numbers = #tpu.dot_dimension_numbers<[1], [0], [0], [1], [0, 0, 1, 1], [], []>} : vector<2x32xf32>, vector<32x16xf32>, vector<2x16xf32> -> vector<2x16xf32>
    %11 = vector.broadcast %5 : vector<1x16xf32> to vector<2x16xf32>
    %12 = arith.addf %10, %11 : vector<2x16xf32>
    %13 = arith.addf %9, %12 : vector<2x16xf32>
    %14 = math.tanh %13 : vector<2x16xf32>
    %15 = vector.broadcast %6 : vector<1x16xf32> to vector<2x16xf32>
    %16 = arith.mulf %14, %15 : vector<2x16xf32>
    %cst_14 = arith.constant dense<0.000000e+00> : vector<2xf32>
    %17 = vector.multi_reduction <add>, %16, %cst_14 [1] : vector<2x16xf32> to vector<2xf32>
    %18 = vector.shape_cast %17 : vector<2xf32> to vector<2x1xf32>
    %cst_15 = arith.constant 1.000000e+00 : f32
    %19 = vector.broadcast %cst_15 : f32 to vector<2x1xf32>
    %20 = arith.mulf %18, %19 : vector<2x1xf32>
    %21 = arith.subf %20, %20 : vector<2x1xf32>
    %22 = math.exp %21 : vector<2x1xf32>
    %23 = vector.broadcast %22 : vector<2x1xf32> to vector<2x32xf32>
    %24 = arith.mulf %0, %23 : vector<2x32xf32>
    %c0_16 = arith.constant 0 : index
    %c0_17 = arith.constant 0 : index
    %25 = vector.load %arg13[%c0_16, %c0_17] : memref<2x32xf32, #tpu.memory_space<vmem>>, vector<2x32xf32>
    tpu.vector_store %arg13[%c0_16, %c0_17], %24 {strides = array<i32>} : memref<2x32xf32, #tpu.memory_space<vmem>>, vector<2x32xf32>,
    %c0_18 = arith.constant 0 : index
    %c0_19 = arith.constant 0 : index
    %26 = vector.load %arg8[%c0_18, %c0_19] : memref<32x16xf32, #tpu.memory_space<vmem>>, vector<32x16xf32>
    %c0_20 = arith.constant 0 : index
    %c0_21 = arith.constant 0 : index
    %27 = vector.load %arg9[%c0_20, %c0_21] : memref<1x16xf32, #tpu.memory_space<vmem>>, vector<1x16xf32>
    %c0_22 = arith.constant 0 : index
    %c0_23 = arith.constant 0 : index
    %28 = vector.load %arg10[%c0_22, %c0_23] : memref<32x16xf32, #tpu.memory_space<vmem>>, vector<32x16xf32>
    %c0_24 = arith.constant 0 : index
    %c0_25 = arith.constant 0 : index
    %29 = vector.load %arg11[%c0_24, %c0_25] : memref<1x16xf32, #tpu.memory_space<vmem>>, vector<1x16xf32>
    %c0_26 = arith.constant 0 : index
    %c0_27 = arith.constant 0 : index
    %30 = vector.load %arg12[%c0_26, %c0_27] : memref<1x16xf32, #tpu.memory_space<vmem>>, vector<1x16xf32>
    %cst_28 = arith.constant dense<0.000000e+00> : vector<2x16xf32>
    %31 = tpu.matmul %1, %26, %cst_28 {dimension_numbers = #tpu.dot_dimension_numbers<[1], [0], [0], [1], [0, 0, 1, 1], [], []>} : vector<2x32xf32>, vector<32x16xf32>, vector<2x16xf32> -> vector<2x16xf32>
    %32 = vector.broadcast %27 : vector<1x16xf32> to vector<2x16xf32>
    %33 = arith.addf %31, %32 : vector<2x16xf32>
    %cst_29 = arith.constant dense<0.000000e+00> : vector<2x16xf32>
    %34 = tpu.matmul %0, %28, %cst_29 {dimension_numbers = #tpu.dot_dimension_numbers<[1], [0], [0], [1], [0, 0, 1, 1], [], []>} : vector<2x32xf32>, vector<32x16xf32>, vector<2x16xf32> -> vector<2x16xf32>
    %35 = vector.broadcast %29 : vector<1x16xf32> to vector<2x16xf32>
    %36 = arith.addf %34, %35 : vector<2x16xf32>
    %37 = arith.addf %33, %36 : vector<2x16xf32>
    %38 = math.tanh %37 : vector<2x16xf32>
    %39 = vector.broadcast %30 : vector<1x16xf32> to vector<2x16xf32>
    %40 = arith.mulf %38, %39 : vector<2x16xf32>
    %cst_30 = arith.constant dense<0.000000e+00> : vector<2xf32>
    %41 = vector.multi_reduction <add>, %40, %cst_30 [1] : vector<2x16xf32> to vector<2xf32>
    %42 = vector.shape_cast %41 : vector<2xf32> to vector<2x1xf32>
    %cst_31 = arith.constant 5.000000e-01 : f32
    %43 = vector.broadcast %cst_31 : f32 to vector<2x1xf32>
    %44 = arith.mulf %42, %43 : vector<2x1xf32>
    %45 = arith.subf %44, %44 : vector<2x1xf32>
    %46 = math.exp %45 : vector<2x1xf32>
    %47 = vector.broadcast %46 : vector<2x1xf32> to vector<2x32xf32>
    %48 = arith.mulf %1, %47 : vector<2x32xf32>
    %c0_32 = arith.constant 0 : index
    %c0_33 = arith.constant 0 : index
    %49 = vector.load %arg14[%c0_32, %c0_33] : memref<2x32xf32, #tpu.memory_space<vmem>>, vector<2x32xf32>
    tpu.vector_store %arg14[%c0_32, %c0_33], %48 {strides = array<i32>} : memref<2x32xf32, #tpu.memory_space<vmem>>, vector<2x32xf32>,
    return
  }
  func.func @transform_0(%arg0: i32) -> (i32, i32) {
    %c0_i32 = arith.constant 0 : i32
    %c0_i32_0 = arith.constant 0 : i32
    return %arg0, %c0_i32 : i32, i32
  }
  func.func @transform_1(%arg0: i32) -> (i32, i32) {
    %c0_i32 = arith.constant 0 : i32
    %c0_i32_0 = arith.constant 0 : i32
    return %arg0, %c0_i32 : i32, i32
  }
  func.func @transform_2(%arg0: i32) -> (i32, i32) {
    %c0_i32 = arith.constant 0 : i32
    %c0_i32_0 = arith.constant 0 : i32
    %c0_i32_1 = arith.constant 0 : i32
    return %c0_i32, %c0_i32_0 : i32, i32
  }
  func.func @transform_3(%arg0: i32) -> (i32, i32) {
    %c0_i32 = arith.constant 0 : i32
    %c0_i32_0 = arith.constant 0 : i32
    %c0_i32_1 = arith.constant 0 : i32
    return %c0_i32, %c0_i32_0 : i32, i32
  }
  func.func @transform_4(%arg0: i32) -> (i32, i32) {
    %c0_i32 = arith.constant 0 : i32
    %c0_i32_0 = arith.constant 0 : i32
    %c0_i32_1 = arith.constant 0 : i32
    return %c0_i32, %c0_i32_0 : i32, i32
  }
  func.func @transform_5(%arg0: i32) -> (i32, i32) {
    %c0_i32 = arith.constant 0 : i32
    %c0_i32_0 = arith.constant 0 : i32
    %c0_i32_1 = arith.constant 0 : i32
    return %c0_i32, %c0_i32_0 : i32, i32
  }
  func.func @transform_6(%arg0: i32) -> (i32, i32) {
    %c0_i32 = arith.constant 0 : i32
    %c0_i32_0 = arith.constant 0 : i32
    %c0_i32_1 = arith.constant 0 : i32
    return %c0_i32, %c0_i32_0 : i32, i32
  }
  func.func @transform_7(%arg0: i32) -> (i32, i32) {
    %c0_i32 = arith.constant 0 : i32
    %c0_i32_0 = arith.constant 0 : i32
    %c0_i32_1 = arith.constant 0 : i32
    return %c0_i32, %c0_i32_0 : i32, i32
  }
  func.func @transform_8(%arg0: i32) -> (i32, i32) {
    %c0_i32 = arith.constant 0 : i32
    %c0_i32_0 = arith.constant 0 : i32
    %c0_i32_1 = arith.constant 0 : i32
    return %c0_i32, %c0_i32_0 : i32, i32
  }
  func.func @transform_9(%arg0: i32) -> (i32, i32) {
    %c0_i32 = arith.constant 0 : i32
    %c0_i32_0 = arith.constant 0 : i32
    %c0_i32_1 = arith.constant 0 : i32
    return %c0_i32, %c0_i32_0 : i32, i32
  }
  func.func @transform_10(%arg0: i32) -> (i32, i32) {
    %c0_i32 = arith.constant 0 : i32
    %c0_i32_0 = arith.constant 0 : i32
    %c0_i32_1 = arith.constant 0 : i32
    return %c0_i32, %c0_i32_0 : i32, i32
  }
  func.func @transform_11(%arg0: i32) -> (i32, i32) {
    %c0_i32 = arith.constant 0 : i32
    %c0_i32_0 = arith.constant 0 : i32
    %c0_i32_1 = arith.constant 0 : i32
    return %c0_i32, %c0_i32_0 : i32, i32
  }
  func.func @transform_12(%arg0: i32) -> (i32, i32) {
    %c0_i32 = arith.constant 0 : i32
    %c0_i32_0 = arith.constant 0 : i32
    return %arg0, %c0_i32 : i32, i32
  }
  func.func @transform_13(%arg0: i32) -> (i32, i32) {
    %c0_i32 = arith.constant 0 : i32
    %c0_i32_0 = arith.constant 0 : i32
    return %arg0, %c0_i32 : i32, i32
  }
}

</mosaic_0001>

<bundles_post_ra>
// kernel: tpu_custom_call.1
= control target key start
LH: loop header
LB: loop body
LE: loop exit
PB: predicated region body
PF: predicated region fallthrough
CT: control target
= control target key end

     0   :  { %19 = vsyncpa [#allocation3], 0  ;;  %vm61_vm0 = vcmask 261120   ;;  %s467_s0 = inlined_call_operand.vmem [shape: f32[2,32], index: 0, kind: input, shape index: {}]   ;;  %s468_s1 = inlined_call_operand.vmem [shape: f32[2,32], index: 1, kind: input, shape index: {}]   ;;  %s469_s2 = inlined_call_operand.vmem [shape: f32[32,16], index: 2, kind: input, shape index: {}]   ;;  %s470_s3 = inlined_call_operand.vmem [shape: f32[1,16], index: 3, kind: input, shape index: {}]   ;;  %s471_s4 = inlined_call_operand.vmem [shape: f32[32,16], index: 4, kind: input, shape index: {}]   ;;  %s472_s5 = inlined_call_operand.vmem [shape: f32[1,16], index: 5, kind: input, shape index: {}]   ;;  %s473_s6 = inlined_call_operand.vmem [shape: f32[1,16], index: 6, kind: input, shape index: {}]   ;;  %s474_s7 = inlined_call_operand.vmem [shape: f32[32,16], index: 7, kind: input, shape index: {}]   ;;  %s475_s8 = inlined_call_operand.vmem [shape: f32[1,16], index: 8, kind: input, shape index: {}]   ;;  %s476_s9 = inlined_call_operand.vmem [shape: f32[32,16], index: 9, kind: input, shape index: {}]   ;;  %s477_s10 = inlined_call_operand.vmem [shape: f32[1,16], index: 10, kind: input, shape index: {}]   ;;  %s478_s11 = inlined_call_operand.vmem [shape: f32[1,16], index: 11, kind: input, shape index: {}]   ;;  %s479_s12 = inlined_call_operand.hbm [shape: f32[2,32], index: 12, kind: output, shape index: {0}]   ;;  %s480_s13 = inlined_call_operand.hbm [shape: f32[2,32], index: 13, kind: output, shape index: {1}]  }
   0x1   :  { %v130_v0 = vld [vmem:[%s474_s7 + $0x18] sm:$0xff]  ;;  %v129_v2 = vld [vmem:[%s474_s7 + $0x10] sm:$0xff]  ;;  %v128_v4 = vld [vmem:[%s474_s7 + $0x8] sm:$0xff] }
   0x2   :  { %v135_v1 = vld [vmem:[%s476_s9 + $0x18] sm:$0xff]  ;;  %153 = vmatpush.msra.mxu2 %v130_v0  ;;  %v134_v3 = vld [vmem:[%s476_s9 + $0x10] sm:$0xff]  ;;  %v133_v5 = vld [vmem:[%s476_s9 + $0x8] sm:$0xff] }
   0x3   :  { %176 = vmatpush.msra.mxu3 %v135_v1  ;;  %v127_v6 = vld [vmem:[%s474_s7] sm:$0xff]  ;;  %v50_v8 = vld [vmem:[%s469_s2 + $0x18] sm:$0xff]  ;;  %v49_v11 = vld [vmem:[%s469_s2 + $0x10] sm:$0xff] }
   0x4   :  { %154 = vmatpush.msra.mxu2 %v129_v2  ;;  %v132_v7 = vld [vmem:[%s476_s9] sm:$0xff]  ;;  %v55_v9 = vld [vmem:[%s471_s4 + $0x18] sm:$0xff]  ;;  %77 = vmatpush.msra.mxu0 %v50_v8  ;;  %v54_v12 = vld [vmem:[%s471_s4 + $0x10] sm:$0xff] }
   0x5   :  { %177 = vmatpush.msra.mxu3 %v134_v3  ;;  %v408_v10 = vld [vmem:[%s468_s1] sm:$0x3]  ;;  %103 = vmatpush.msra.mxu1 %v55_v9  ;;  %v48_v14 = vld [vmem:[%s469_s2 + $0x8] sm:$0xff] }
   0x6   :  { %155 = vmatpush.msra.mxu2 %v128_v4  ;;  %v419_v13 = vld [vmem:[%s467_s0] sm:$0x3]  ;;  %v53_v15 = vld [vmem:[%s471_s4 + $0x8] sm:$0xff]  ;;  %78 = vmatpush.msra.mxu0 %v49_v11 }
   0x7   :  { %178 = vmatpush.msra.mxu3 %v133_v5  ;;  %104 = vmatpush.msra.mxu1 %v54_v12  ;;  %v47_v16 = vld [vmem:[%s469_s2] sm:$0xff] }
   0x8   :  { %156 = vmatpush.msra.mxu2 %v127_v6  ;;  %v52_v17 = vld [vmem:[%s471_s4] sm:$0xff] }
   0x9   :  { %179 = vmatpush.msra.mxu3 %v132_v7  ;;  %233 = vmatmul.msk.f32.vlgmr.msra.gmra.mxu2 %vm61_vm0, %v408_v10 }
   0xa   :  { %234 = vmatmul.msk.f32.vlgmr.msra.gmra.mxu3 %vm61_vm0, %v419_v13 }
   0xb   :  { %20 = vsyncpa [#allocation5], 0  ;;  %79 = vmatpush.msra.mxu0 %v48_v14  ;;  %105 = vmatpush.msra.mxu1 %v53_v15  ;;  %v239_v18 = vld [vmem:[%s470_s3] ss:$0 sm:$0xff]  ;;  %vm117_vm1 = vcmask 123904   ;;  %vm125_vm2 = vcmask 254976  }
   0xc   :  { %v240_v19 = vld [vmem:[%s472_s5] ss:$0 sm:$0xff]  ;;  %s304_s9 = smov [#allocation2]   ;;  %s206_s1 = sshll.u32 %s479_s12, 4  ;;  %s207_s1 = int_to_ptr.hbm [resolvable:$true] %s206_s1 }
   0xd   :  { %80 = vmatpush.msra.mxu0 %v47_v16  ;;  %106 = vmatpush.msra.mxu1 %v52_v17  ;;  %v237_v20 = vld [vmem:[%s475_s8] ss:$0 sm:$0xff]  ;;  %s204_s14 = sshll.u32 %s304_s9, 4  ;;  %s205_s14 = int_to_ptr.vmem [resolvable:$true] %s204_s14 }
   0xe   :  { %231 = vmatmul.msk.f32.vlgmr.msra.gmra.mxu0 %vm61_vm0, %v419_v13  ;;  %232 = vmatmul.msk.f32.vlgmr.msra.gmra.mxu1 %vm61_vm0, %v408_v10  ;;  %v238_v21 = vld [vmem:[%s477_s10] ss:$0 sm:$0xff] }
   0xf   :  { %v241_v32 = vld [vmem:[%s478_s11] ss:$0 sm:$0xff]  ;;  %s303_s11 = smov [#allocation4]  }
  0x10   :  { %v242_v35 = vld [vmem:[%s473_s6] ss:$0 sm:$0xff]  ;;  %s215_s29 = sshll.u32 %s303_s11, 4  ;;  %s217_s6 = sshll.u32 %s480_s13, 4  ;;  %s216_s29 = int_to_ptr.vmem [resolvable:$true] %s215_s29  ;;  %s218_s6 = int_to_ptr.hbm [resolvable:$true] %s217_s6 }
  0x8b   :  { %v82_v22 = vpop.f32.mrf.mxu0  ;;  %v108_v23 = vpop.f32.mrf.mxu1 }
  0x8c   :  { %v83_v24 = vadd.f32 %v239_v18, %v82_v22  ;;  %v109_v25 = vadd.f32 %v240_v19, %v108_v23  ;;  %v158_v26 = vpop.f32.mrf.mxu2 }
  0x8d   :  { %v181_v27 = vpop.f32.mrf.mxu3  ;;  %v159_v28 = vadd.f32 %v237_v20, %v158_v26 }
  0x8e   :  { %v182_v29 = vadd.f32 %v238_v21, %v181_v27  ;;  %v111_v31 = vadd.f32 %v109_v25, %v83_v24 }
  0x90   :  { %v184_v30 = vadd.f32 %v182_v29, %v159_v28 }
  0x92   :  { %243 = vtanh.f32 %v184_v30 }
  0x93   :  { %245 = vtanh.f32 %v111_v31 }
  0x98   :  { %v244_v33 = vpop.eup %243 }
  0x99   :  { %v189_v34 = vmul.f32 %v244_v33, %v241_v32  ;;  %v246_v36 = vpop.eup %245 }
  0x9a   :  { %v116_v38 = vmul.f32 %v246_v36, %v242_v35 }
  0x9b   :  { %v190_v37 = vsel %vm117_vm1, %v189_v34, 0.0 }
  0x9c   :  { %191 = vadd.xlane.f32.xlu0 %v190_v37  ;;  %v118_v39 = vsel %vm117_vm1, %v116_v38, 0.0 }
  0xa4   :  { %119 = vadd.xlane.f32.xlu0 %v118_v39 }
 0x10f   :  { %v192_v40 = vpop.xlane.xlu0 %191 }
 0x110   :  { %v193_v41 = vmul.f32 0.5, %v192_v40 }
 0x112   :  { %v194_v42 = vsub.f32 %v193_v41, %v193_v41 }
 0x114   :  { %v195_v43 = vmul.f32 1.442695, %v194_v42 }
 0x116   :  { %247 = vpow2.f32 %v195_v43 }
 0x117   :  { %v120_v44 = vpop.xlane.xlu0 %119 }
 0x118   :  { %v121_v45 = vsub.f32 %v120_v44, %v120_v44 }
 0x11a   :  { %v122_v46 = vmul.f32 1.442695, %v121_v45 }
 0x11c   :  { %v248_v47 = vpop.eup %247  ;;  %249 = vpow2.f32 %v122_v46 }
 0x11d   :  { %v197_v48 = vmul.f32 %v248_v47, %v408_v10 }
 0x11f   :  { %198 = vst.msk [vmem:[#allocation4] sm:$0x3] %vm125_vm2, %v197_v48 }
 0x120   :  { %220 = dma.vmem_to_hbm [thread:$0]  %s216_s29, 32, %s218_s6, [#allocation5]  }
 0x122   :  { %v250_v49 = vpop.eup %249 }
 0x123   :  { %v124_v50 = vmul.f32 %v250_v49, %v419_v13 }
 0x125   :  { %126 = vst.msk [vmem:[#allocation2] sm:$0x3] %vm125_vm2, %v124_v50 }
 0x126   :  { %209 = dma.vmem_to_hbm [thread:$0]  %s205_s14, 32, %s207_s1, [#allocation3]  }
 0x127   :  { %299 = dma.done.wait [#allocation3], 32  }
 0x128   :  { %300 = vsyncadd [#allocation3], 4294967264 }
 0x129   :  { %301 = dma.done.wait [#allocation5], 32  }
 0x12a   :  { %302 = vsyncadd [#allocation5], 4294967264 }
 0x12b   :  { %229 = vsyncpa [#allocation3], 1 }
 0x12c   :  { %230 = vsyncpa [#allocation5], 1 }

</bundles_post_ra>
